<compile_context>
chip_gen: v7x
topology: tpu7x:2x2x1
jax: 0.10.0
libtpu: 0.0.40
codegen_flags: <defaults>
</compile_context>

<pallas_src>
import functools
import math

import jax
import jax.numpy as jnp
from jax import lax
from jax.experimental import pallas as pl
from jax.experimental.pallas import tpu as pltpu

LANE = 128
SUBLANE = 8
MAX_BLOCK_ROWS = 2048   # 2048 x 128 f32 = 1 MiB per input block
NUM_CORES = 2           # stream split for v7x megacore; runs fine on 1-TC chips


def _loss_kernel(x_ref, out_ref, acc_ref, *, mode, target_val, rows,
                 block_rows, steps):
    c = pl.program_id(0)          # core-split index ("parallel")
    i = pl.program_id(1)          # streaming index  ("arbitrary")
    b = c * steps + i             # global row-block index (may exceed data)

    @pl.when(i == 0)
    def _():
        acc_ref[...] = jnp.zeros_like(acc_ref)

    x = x_ref[...].astype(jnp.float32)

    if mode == "vanilla":
        # BCEWithLogits: max(x, 0) - x*t + log(1 + exp(-|x|))
        t = jnp.float32(target_val)
        elem = jnp.maximum(x, 0.0) - x * t + jnp.log1p(jnp.exp(-jnp.abs(x)))
    elif mode == "lsgan":
        elem = (x - jnp.float32(target_val)) ** 2
    elif mode == "wgan-gp":
        # target_val is the sign: -1.0 for real, +1.0 for fake
        elem = x * jnp.float32(target_val)
    else:
        raise NotImplementedError(f"gan_type:[{mode}] not found")

    # Number of rows of this block that actually hold data (row-count math,
    # never flat element indices, so no int32 overflow concern).
    valid_rows = rows - b * block_rows

    @pl.when(valid_rows >= block_rows)       # hot path: full block, no mask
    def _():
        acc_ref[...] += elem

    @pl.when(valid_rows < block_rows)        # ragged / out-of-range edge block
    def _():
        row_ids = lax.broadcasted_iota(jnp.int32, (block_rows, LANE), 0)
        acc_ref[...] += jnp.where(row_ids < valid_rows, elem, 0.0)

    @pl.when(i == pl.num_programs(1) - 1)    # per-core epilogue: single reduce
    def _():
        out_ref[...] = jnp.broadcast_to(jnp.sum(acc_ref[...]), out_ref.shape)


class GANLoss:
    """JAX/Pallas equivalent of the PyTorch GANLoss module."""

    def __init__(self, gan_type, real_label=1.0, fake_label=0.0):
        self.gan_type = gan_type.lower()
        self.real_label = float(real_label)
        self.fake_label = float(fake_label)
        if self.gan_type not in ("vanilla", "lsgan", "wgan-gp"):
            raise NotImplementedError(
                "gan_type:[{}] not found".format(gan_type))

    def _zero_elem_loss(self, target_val):
        # Per-element loss contributed by a zero padding element.
        if self.gan_type == "vanilla":
            return math.log(2.0)          # max(0,0) - 0*t + log(1+exp(0))
        if self.gan_type == "lsgan":
            return float(target_val) ** 2
        return 0.0                        # wgan-gp: 0 * sign

    def __call__(self, x, target_is_real):
        # Resolve the (static, python-level) target value.
        if self.gan_type == "wgan-gp":
            target_val = -1.0 if target_is_real else 1.0
        else:
            target_val = self.real_label if target_is_real else self.fake_label

        flat = jnp.reshape(x, (-1,))
        n = flat.shape[0]

        # Pad with zeros only up to a whole 128-lane row (<=127 elements, and
        # only when needed); their contribution is subtracted analytically.
        lane_pad = (-n) % LANE
        if lane_pad:
            flat = jnp.pad(flat, (0, lane_pad))
        rows = (n + lane_pad) // LANE
        x2d = flat.reshape(rows, LANE)

        block_rows = rows if rows <= MAX_BLOCK_ROWS else MAX_BLOCK_ROWS
        nblocks = pl.cdiv(rows, block_rows)
        ncores = NUM_CORES if nblocks >= NUM_CORES else 1
        steps = pl.cdiv(nblocks, ncores)

        kernel = functools.partial(
            _loss_kernel, mode=self.gan_type, target_val=target_val,
            rows=rows, block_rows=block_rows, steps=steps)

        out = pl.pallas_call(
            kernel,
            out_shape=jax.ShapeDtypeStruct((ncores, SUBLANE, LANE),
                                           jnp.float32),
            grid_spec=pltpu.PrefetchScalarGridSpec(
                num_scalar_prefetch=0,
                grid=(ncores, steps),
                in_specs=[pl.BlockSpec(
                    (block_rows, LANE),
                    # Clamp so trailing grid steps of the second core never
                    # issue an out-of-bounds DMA; their data is row-masked to
                    # zero inside the kernel.
                    lambda c, i: (jnp.minimum(c * steps + i, nblocks - 1), 0))],
                out_specs=pl.BlockSpec((1, SUBLANE, LANE),
                                       lambda c, i: (c, 0, 0)),
                scratch_shapes=[pltpu.VMEM((block_rows, LANE), jnp.float32)]),
            compiler_params=pltpu.CompilerParams(
                dimension_semantics=("parallel", "arbitrary")),
        )(x2d)

        total = jnp.sum(out[:, 0, 0])
        if lane_pad:
            total = total - jnp.float32(
                lane_pad * self._zero_elem_loss(target_val))
        return total / jnp.float32(n)


def _reference(x, target_is_real, gan_type, real_label=1.0, fake_label=0.0):
    x = x.astype(jnp.float32)
    if gan_type == "wgan-gp":
        return -jnp.mean(x) if target_is_real else jnp.mean(x)
    t = real_label if target_is_real else fake_label
    if gan_type == "vanilla":
        elem = jnp.maximum(x, 0.0) - x * t + jnp.log1p(jnp.exp(-jnp.abs(x)))
        return jnp.mean(elem)
    if gan_type == "lsgan":
        return jnp.mean((x - t) ** 2)
    raise NotImplementedError


if __name__ == "__main__":
    key = jax.random.PRNGKey(0)
    # Discriminator logits, NCHW layout: [N=2, C=4, H=16, W=16]
    x = jax.random.normal(key, (2, 4, 16, 16), dtype=jnp.float32)

    ok = True
    for gan_type in ("vanilla", "lsgan", "wgan-gp"):
        loss_fn = GANLoss(gan_type)
        for target_is_real in (True, False):
            got = jax.block_until_ready(loss_fn(x, target_is_real))
            want = _reference(x, target_is_real, gan_type)
            if not jnp.allclose(got, want, atol=1e-5, rtol=1e-5):
                ok = False
                print(f"MISMATCH {gan_type} real={target_is_real}: "
                      f"{got} vs {want}")

    if ok:
        print("KERNEL_OK")
</pallas_src>

<mosaic_0001>
module attributes {stable_mosaic.version = 11 : i64} {
  func.func @_loss_kernel(%arg0: i32, %arg1: i32, %arg2: memref<16x128xf32, #tpu.memory_space<vmem>>, %arg3: memref<1x8x128xf32, #tpu.memory_space<vmem>>, %arg4: memref<16x128xf32, #tpu.memory_space<vmem>>) attributes {dimension_semantics = [#tpu.dimension_semantics<parallel>, #tpu.dimension_semantics<arbitrary>], iteration_bounds = array<i64: 1, 1>, scalar_prefetch = 0 : i64, scratch_operands = 1 : i64, tpu.core_type = #tpu.core_type<tc>, window_params = [{transform_indices = @transform_0, window_bounds = array<i64: 16, 128>}, {transform_indices = @transform_1, window_bounds = array<i64: 1, 8, 128>}]} {
    %c1_i32 = arith.constant 1 : i32
    %0 = arith.muli %arg0, %c1_i32 : i32
    %1 = arith.addi %0, %arg1 : i32
    %c0_i32 = arith.constant 0 : i32
    %2 = arith.cmpi eq, %arg1, %c0_i32 : i32
    %3 = arith.extui %2 : i1 to i32
    %c0_i32_0 = arith.constant 0 : i32
    %4 = arith.cmpi ne, %3, %c0_i32_0 : i32
    scf.if %4 {
      %cst_11 = arith.constant 0.000000e+00 : f32
      %28 = vector.broadcast %cst_11 : f32 to vector<16x128xf32>
      %c0_12 = arith.constant 0 : index
      %c0_13 = arith.constant 0 : index
      %29 = vector.load %arg4[%c0_12, %c0_13] : memref<16x128xf32, #tpu.memory_space<vmem>>, vector<16x128xf32>
      tpu.vector_store %arg4[%c0_12, %c0_13], %28 {strides = array<i32>} : memref<16x128xf32, #tpu.memory_space<vmem>>, vector<16x128xf32>,
    } else {
    }
    %c0 = arith.constant 0 : index
    %c0_1 = arith.constant 0 : index
    %5 = vector.load %arg2[%c0, %c0_1] : memref<16x128xf32, #tpu.memory_space<vmem>>, vector<16x128xf32>
    %cst = arith.constant 0.000000e+00 : f32
    %6 = vector.broadcast %cst : f32 to vector<16x128xf32>
    %7 = arith.maximumf %5, %6 : vector<16x128xf32>
    %cst_2 = arith.constant 1.000000e+00 : f32
    %8 = vector.broadcast %cst_2 : f32 to vector<16x128xf32>
    %9 = arith.mulf %5, %8 : vector<16x128xf32>
    %10 = arith.subf %7, %9 : vector<16x128xf32>
    %11 = math.absf %5 : vector<16x128xf32>
    %cst_3 = arith.constant 0.000000e+00 : f32
    %12 = vector.broadcast %cst_3 : f32 to vector<16x128xf32>
    %13 = arith.subf %12, %11 : vector<16x128xf32>
    %14 = math.exp %13 : vector<16x128xf32>
    %15 = math.log1p %14 : vector<16x128xf32>
    %16 = arith.addf %10, %15 : vector<16x128xf32>
    %c16_i32 = arith.constant 16 : i32
    %17 = arith.muli %1, %c16_i32 : i32
    %c16_i32_4 = arith.constant 16 : i32
    %18 = arith.subi %c16_i32_4, %17 : i32
    %c16_i32_5 = arith.constant 16 : i32
    %19 = arith.cmpi sge, %18, %c16_i32_5 : i32
    %20 = arith.extui %19 : i1 to i32
    %c0_i32_6 = arith.constant 0 : i32
    %21 = arith.cmpi ne, %20, %c0_i32_6 : i32
    scf.if %21 {
      %c0_11 = arith.constant 0 : index
      %c0_12 = arith.constant 0 : index
      %28 = vector.load %arg4[%c0_11, %c0_12] : memref<16x128xf32, #tpu.memory_space<vmem>>, vector<16x128xf32>
      %29 = arith.addf %28, %16 : vector<16x128xf32>
      %c0_13 = arith.constant 0 : index
      %c0_14 = arith.constant 0 : index
      %30 = vector.load %arg4[%c0_13, %c0_14] : memref<16x128xf32, #tpu.memory_space<vmem>>, vector<16x128xf32>
      tpu.vector_store %arg4[%c0_13, %c0_14], %29 {strides = array<i32>} : memref<16x128xf32, #tpu.memory_space<vmem>>, vector<16x128xf32>,
    } else {
    }
    %c16_i32_7 = arith.constant 16 : i32
    %22 = arith.cmpi slt, %18, %c16_i32_7 : i32
    %23 = arith.extui %22 : i1 to i32
    %c0_i32_8 = arith.constant 0 : i32
    %24 = arith.cmpi ne, %23, %c0_i32_8 : i32
    scf.if %24 {
      %28 = tpu.iota {dimensions = array<i32: 0>} : vector<16x128xi32>
      %c0_11 = arith.constant 0 : index
      %c0_12 = arith.constant 0 : index
      %29 = vector.load %arg4[%c0_11, %c0_12] : memref<16x128xf32, #tpu.memory_space<vmem>>, vector<16x128xf32>
      %30 = vector.broadcast %18 : i32 to vector<16x128xi32>
      %31 = arith.cmpi slt, %28, %30 : vector<16x128xi32>
      %cst_13 = arith.constant 0.000000e+00 : f32
      %32 = vector.broadcast %cst_13 : f32 to vector<16x128xf32>
      %33 = arith.select %31, %16, %32 : vector<16x128xi1>, vector<16x128xf32>
      %34 = arith.addf %29, %33 : vector<16x128xf32>
      %c0_14 = arith.constant 0 : index
      %c0_15 = arith.constant 0 : index
      %35 = vector.load %arg4[%c0_14, %c0_15] : memref<16x128xf32, #tpu.memory_space<vmem>>, vector<16x128xf32>
      tpu.vector_store %arg4[%c0_14, %c0_15], %34 {strides = array<i32>} : memref<16x128xf32, #tpu.memory_space<vmem>>, vector<16x128xf32>,
    } else {
    }
    %c0_i32_9 = arith.constant 0 : i32
    %25 = arith.cmpi eq, %arg1, %c0_i32_9 : i32
    %26 = arith.extui %25 : i1 to i32
    %c0_i32_10 = arith.constant 0 : i32
    %27 = arith.cmpi ne, %26, %c0_i32_10 : i32
    scf.if %27 {
      %c0_11 = arith.constant 0 : index
      %c0_12 = arith.constant 0 : index
      %28 = vector.load %arg4[%c0_11, %c0_12] : memref<16x128xf32, #tpu.memory_space<vmem>>, vector<16x128xf32>
      %29 = vector.shape_cast %28 : vector<16x128xf32> to vector<1x16x128xf32>
      %cst_13 = arith.constant dense<0.000000e+00> : vector<1xf32>
      %30 = vector.multi_reduction <add>, %29, %cst_13 [1, 2] : vector<1x16x128xf32> to vector<1xf32>
      %31 = vector.shape_cast %30 : vector<1xf32> to vector<1x1x1xf32>
      %32 = vector.extract %31[0, 0, 0] : f32 from vector<1x1x1xf32>
      %33 = vector.broadcast %32 : f32 to vector<1x8x128xf32>
      %c0_14 = arith.constant 0 : index
      %c0_15 = arith.constant 0 : index
      %c0_16 = arith.constant 0 : index
      %34 = vector.load %arg3[%c0_14, %c0_15, %c0_16] : memref<1x8x128xf32, #tpu.memory_space<vmem>>, vector<1x8x128xf32>
      tpu.vector_store %arg3[%c0_14, %c0_15, %c0_16], %33 {strides = array<i32>} : memref<1x8x128xf32, #tpu.memory_space<vmem>>, vector<1x8x128xf32>,
    } else {
    }
    return
  }
  func.func @transform_0(%arg0: i32, %arg1: i32) -> (i32, i32) {
    %c1_i32 = arith.constant 1 : i32
    %0 = arith.muli %arg0, %c1_i32 : i32
    %1 = arith.addi %0, %arg1 : i32
    %c0_i32 = arith.constant 0 : i32
    %2 = arith.minsi %1, %c0_i32 : i32
    %c0_i32_0 = arith.constant 0 : i32
    %c0_i32_1 = arith.constant 0 : i32
    return %2, %c0_i32_0 : i32, i32
  }
  func.func @transform_1(%arg0: i32, %arg1: i32) -> (i32, i32, i32) {
    %c0_i32 = arith.constant 0 : i32
    %c0_i32_0 = arith.constant 0 : i32
    %c0_i32_1 = arith.constant 0 : i32
    return %arg0, %c0_i32, %c0_i32_0 : i32, i32, i32
  }
}

</mosaic_0001>

<bundles_post_ra>
// kernel: tpu_custom_call.1
= control target key start
LH: loop header
LB: loop body
LE: loop exit
PB: predicated region body
PF: predicated region fallthrough
CT: control target
= control target key end

     0   :  { %6 = vsyncpa [#allocation4], 0  ;;  %s238_s0 = inlined_call_operand.hbm [shape: f32[16,128], index: 0, kind: input, shape index: {}]   ;;  %s239_s1 = inlined_call_operand.hbm [shape: f32[1,8,128], index: 1, kind: output, shape index: {}]  }
   0x1   :  { %7 = vsyncpa [#allocation5], 0  ;;  %s200_s6 = smov [#allocation3]   ;;  %s152_s10 = scalar_lea.hbm %s238_s0, 256 }
   0x2   :  { %s19_s7 = sshll.u32 %s200_s6, 4  ;;  %p153_p0 = scmp.ne.s32.totalorder %s238_s0, %s152_s10  ;;  %s20_s7 = int_to_ptr.vmem [resolvable:$true] %s19_s7 }
   0x3   :  { %p156_p1 = scmp.lt.u32.totalorder %s152_s10, %s238_s0 }
   0x5   :  { %p158_p2 = pnand %p156_p1, %p153_p0 }
   0x7   :  { %161 = shalt.err (!%p158_p2)
}
   0x8   :  { %s162_s15 = scalar_lea.vmem %s20_s7, 256  ;;  %p167_p4 = scmp.lt.s32.totalorder %s20_s7, %s20_s7 }
   0x9   :  { %p163_p3 = scmp.ne.s32.totalorder %s20_s7, %s162_s15  ;;  %p168_p5 = scmp.lt.s32.totalorder %s162_s15, %s162_s15 }
   0xb   :  { %p169_p6 = por %p168_p5, %p167_p4 }
   0xd   :  { %p170_p7 = pnand %p169_p6, %p163_p3 }
   0xf   :  { %173 = shalt.err (!%p170_p7)
}
  0x10   :  { %s201_s16 = smov 128   ;;  %s202_s17 = smov 8  }
  0x11   :  { %25 = dma.hbm_to_vmem [thread:$0]  %s238_s0, 256, %s20_s7, [#allocation4], %s201_s16, %s201_s16, %s202_s17  }
  0x12   :  { %196 = dma.done.wait [#allocation4], 256  }
  0x13   :  { %197 = vsyncadd [#allocation4], 4294967040  ;;  %v40_v0 = vld [vmem:[#allocation3] sm:$0xff]  ;;  %v41_v1 = vld [vmem:[#allocation3 + $0x8] sm:$0xff]  ;;  %s203_s0 = smov [#allocation6]  }
  0x14   :  { %v46_v2 = vand.u32 2147483647, %v40_v0  ;;  %v47_v3 = vand.u32 2147483647, %v41_v1  ;;  %v42_v15 = vmax.f32 %v40_v0, 0.0  ;;  %v43_v18 = vmax.f32 %v41_v1, 0.0 }
  0x15   :  { %s127_s20 = sshll.u32 %s203_s0, 4  ;;  %s128_s20 = int_to_ptr.vmem [resolvable:$true] %s127_s20 }
  0x16   :  { %v48_v4 = vsub.f32 0.0, %v46_v2  ;;  %v49_v5 = vsub.f32 0.0, %v47_v3  ;;  %v44_v22 = vsub.f32 %v42_v15, %v40_v0  ;;  %v45_v25 = vsub.f32 %v43_v18, %v41_v1  ;;  %s174_s22 = scalar_lea.vmem %s128_s20, 128  ;;  %p179_p9 = scmp.lt.s32.totalorder %s128_s20, %s128_s20 }
  0x17   :  { %p175_p8 = scmp.ne.s32.totalorder %s128_s20, %s174_s22  ;;  %p180_p10 = scmp.lt.s32.totalorder %s174_s22, %s174_s22 }
  0x18   :  { %v50_v6 = vmul.f32 1.442695, %v48_v4  ;;  %v52_v7 = vmul.f32 1.442695, %v49_v5 }
  0x19   :  { %p181_p11 = por %p180_p10, %p179_p9 }
  0x1a   :  { %144 = vpow2.f32 %v50_v6 }
  0x1b   :  { %146 = vpow2.f32 %v52_v7  ;;  %p182_p12 = pnand %p181_p11, %p175_p8 }
  0x24   :  { %v145_v8 = vpop.eup %144 }
  0x25   :  { %v147_v9 = vpop.eup %146  ;;  %v54_v10 = vadd.f32 1.0, %v145_v8  ;;  %v57_v12 = vmul.f32 -0.5, %v145_v8  ;;  %v60_v16 = vand.u32 2147483647, %v145_v8 }
  0x26   :  { %v63_v11 = vadd.f32 1.0, %v147_v9  ;;  %v66_v13 = vmul.f32 -0.5, %v147_v9  ;;  %v69_v19 = vand.u32 2147483647, %v147_v9 }
  0x27   :  { %148 = vlog2.f32 %v54_v10  ;;  %v58_v14 = vadd.f32 1.0, %v57_v12  ;;  %vm61_vm0 = vcmp.lt.f32.partialorder %v60_v16, 0.0004427343 }
  0x28   :  { %150 = vlog2.f32 %v63_v11  ;;  %v67_v17 = vadd.f32 1.0, %v66_v13  ;;  %vm70_vm1 = vcmp.lt.f32.partialorder %v69_v19, 0.0004427343 }
  0x29   :  { %v59_v20 = vmul.f32 %v145_v8, %v58_v14 }
  0x2a   :  { %v68_v23 = vmul.f32 %v147_v9, %v67_v17 }
  0x31   :  { %v149_v21 = vpop.eup %148 }
  0x32   :  { %v151_v24 = vpop.eup %150  ;;  %v56_v26 = vmul.f32 0.6931472, %v149_v21 }
  0x33   :  { %v65_v27 = vmul.f32 0.6931472, %v151_v24 }
  0x34   :  { %v62_v28 = vsel %vm61_vm0, %v59_v20, %v56_v26 }
  0x35   :  { %v71_v29 = vsel %vm70_vm1, %v68_v23, %v65_v27  ;;  %v72_v30 = vadd.f32 %v62_v28, %v44_v22 }
  0x36   :  { %v73_v31 = vadd.f32 %v71_v29, %v45_v25 }
  0x38   :  { %v109_v32 = vadd.f32 %v73_v31, %v72_v30 }
  0x3a   :  { %110 = vadd.xlane.f32.xlu0 %v109_v32 }
  0xc7   :  { %v111_v33 = vpop.xlane.xlu0 %110 }
  0xc8   :  { %v112_v34 = vrot.slane %v111_v33, 4 }
  0xca   :  { %v113_v35 = vadd.f32 %v112_v34, %v111_v33 }
  0xcc   :  { %v114_v36 = vrot.slane %v113_v35, 2 }
  0xce   :  { %v115_v37 = vadd.f32 %v114_v36, %v113_v35 }
  0xd0   :  { %v116_v38 = vrot.slane %v115_v37, 1 }
  0xd2   :  { %v117_v39 = vadd.f32 %v116_v38, %v115_v37 }
  0xd4   :  { %138 = vpush %v117_v39 }
 0x105   :  { %s139_s21 = spop %138 }
 0x106   :  { %v119_v40 = vstv %s139_s21 }
 0x107   :  { %120 = vst [vmem:[#allocation6] sm:$0xff] %v119_v40 }
 0x108   :  { %185 = shalt.err (!%p182_p12)
}
 0x109   :  { %s186_s25 = scalar_lea.hbm %s239_s1, 128 }
 0x10a   :  { %p187_p13 = scmp.ne.s32.totalorder %s239_s1, %s186_s25  ;;  %p190_p0 = scmp.lt.u32.totalorder %s186_s25, %s239_s1 }
 0x10c   :  { %p192_p1 = pnand %p190_p0, %p187_p13 }
 0x10e   :  { %195 = shalt.err (!%p192_p1)
}
 0x10f   :  { %130 = dma.vmem_to_hbm [thread:$0]  %s128_s20, 128, %s239_s1, [#allocation5]  }
 0x110   :  { %198 = dma.done.wait [#allocation5], 128  }
 0x111   :  { %199 = vsyncadd [#allocation5], 4294967168 }
 0x112   :  { %134 = vsyncpa [#allocation4], 1 }
 0x113   :  { %135 = vsyncpa [#allocation5], 1 }

</bundles_post_ra>
